<compile_context>
chip_gen: v7x
topology: tpu7x:2x2x1
jax: 0.10.0
libtpu: 0.0.40
codegen_flags: <defaults>
</compile_context>

<pallas_src>
import functools

import jax
import jax.numpy as jnp
from jax.experimental import pallas as pl
from jax.experimental.pallas import tpu as pltpu


def _biasfree_ln_kernel(x_ref, w_ref, o_ref):
    # x_ref: (ROW_BLOCK, C), w_ref: (1, C), o_ref: (ROW_BLOCK, C)
    x = x_ref[...].astype(jnp.float32)
    w = w_ref[...].astype(jnp.float32)                 # (1, C), broadcasts over rows
    inv_c = 1.0 / x.shape[-1]
    s1 = jnp.sum(x, axis=-1, keepdims=True) * inv_c    # E[x]
    s2 = jnp.sum(x * x, axis=-1, keepdims=True) * inv_c  # E[x^2]
    var = jnp.maximum(s2 - s1 * s1, 0.0)               # unbiased=False variance
    inv = jax.lax.rsqrt(var + 1e-5)
    o_ref[...] = (x * inv * w).astype(o_ref.dtype)


def _round_up(a, b):
    return ((a + b - 1) // b) * b


def _pick_row_block(R, C, dtype):
    """Largest useful row tile: multiple of the sublane granularity, capped at
    1024 rows (HBM roofline saturates there) and by a conservative VMEM budget
    so double-buffered in+out tiles fit the 16 MiB scoped default on v5e."""
    itemsize = jnp.dtype(dtype).itemsize
    min_rows = {4: 8, 2: 16, 1: 32}.get(itemsize, 8)
    budget_bytes = 8 * 1024 * 1024
    # 2x double-buffered (in + out) tiles plus ~2 f32-sized temporaries per row.
    bytes_per_row = max(C * (4 * itemsize + 8), 1)
    rb = max(min_rows, budget_bytes // bytes_per_row)
    rb = min(rb, 1024)
    rb = min(rb, _round_up(R, min_rows))   # don't over-pad tiny inputs
    rb = max(min_rows, (rb // min_rows) * min_rows)
    return int(rb)


@functools.partial(jax.jit, static_argnames=("row_block",))
def biasfree_layernorm(x, weight, row_block=None):
    """x: (..., C), weight: (C,). Returns same shape/dtype as x."""
    orig_shape = x.shape
    C = orig_shape[-1]
    x2 = x.reshape(-1, C)
    R = x2.shape[0]

    if row_block is None:
        row_block = _pick_row_block(R, C, x.dtype)

    # Pad rows so the perf-optimal tile can be used for any batch*seq product.
    R_pad = _round_up(R, row_block)
    if R_pad != R:
        x2 = jnp.pad(x2, ((0, R_pad - R), (0, 0)))

    w2 = weight.reshape(1, C)

    out = pl.pallas_call(
        _biasfree_ln_kernel,
        out_shape=jax.ShapeDtypeStruct((R_pad, C), x.dtype),
        grid_spec=pltpu.PrefetchScalarGridSpec(
            num_scalar_prefetch=0,
            grid=(R_pad // row_block,),
            in_specs=[
                pl.BlockSpec((row_block, C), lambda i: (i, 0)),
                pl.BlockSpec((1, C), lambda i: (0, 0)),   # weight VMEM-resident
            ],
            out_specs=pl.BlockSpec((row_block, C), lambda i: (i, 0)),
        ),
        compiler_params=pltpu.CompilerParams(
            dimension_semantics=("parallel",),
            vmem_limit_bytes=32 * 1024 * 1024,
        ),
    )(x2, w2)

    if R_pad != R:
        out = out[:R]
    return out.reshape(orig_shape)


def _reference(x, weight):
    xf = x.astype(jnp.float32)
    mean = jnp.mean(xf, axis=-1, keepdims=True)
    var = jnp.mean((xf - mean) ** 2, axis=-1, keepdims=True)
    return (xf / jnp.sqrt(var + 1e-5) * weight.astype(jnp.float32)).astype(x.dtype)


if __name__ == "__main__":
    key = jax.random.PRNGKey(0)

    # Case 1: matches the module's typical use, small shapes (batch=2, seq=8, hidden=32).
    B, S, C = 2, 8, 32
    x = jax.random.normal(key, (B, S, C), dtype=jnp.float32)
    weight = jnp.ones((C,), dtype=jnp.float32)  # nn.Parameter(torch.ones(C))
    out = jax.block_until_ready(biasfree_layernorm(x, weight))
    ref = _reference(x, weight)
    assert out.shape == x.shape and out.dtype == x.dtype
    assert jnp.allclose(out, ref, atol=1e-5, rtol=1e-5)

    # Case 2: non-divisible row count (exercises the padding path), C=48.
    key2 = jax.random.PRNGKey(1)
    x2 = jax.random.normal(key2, (3, 7, 48), dtype=jnp.float32)
    w2 = jnp.ones((48,), dtype=jnp.float32)
    out2 = jax.block_until_ready(biasfree_layernorm(x2, w2))
    ref2 = _reference(x2, w2)
    assert out2.shape == x2.shape
    assert jnp.allclose(out2, ref2, atol=1e-5, rtol=1e-5)

    print("KERNEL_OK")
</pallas_src>

<mosaic_0001>
module attributes {stable_mosaic.version = 11 : i64} {
  func.func @_biasfree_ln_kernel(%arg0: i32, %arg1: memref<16x32xf32, #tpu.memory_space<vmem>>, %arg2: memref<1x32xf32, #tpu.memory_space<vmem>>, %arg3: memref<16x32xf32, #tpu.memory_space<vmem>>) attributes {dimension_semantics = [#tpu.dimension_semantics<parallel>], iteration_bounds = array<i64: 1>, scalar_prefetch = 0 : i64, scratch_operands = 0 : i64, tpu.core_type = #tpu.core_type<tc>, window_params = [{transform_indices = @transform_0, window_bounds = array<i64: 16, 32>}, {pipeline_mode = #tpu.pipeline_mode<synchronous>, transform_indices = @transform_1, window_bounds = array<i64: 1, 32>}, {transform_indices = @transform_2, window_bounds = array<i64: 16, 32>}]} {
    %c0 = arith.constant 0 : index
    %c0_0 = arith.constant 0 : index
    %0 = vector.load %arg1[%c0, %c0_0] : memref<16x32xf32, #tpu.memory_space<vmem>>, vector<16x32xf32>
    %c0_1 = arith.constant 0 : index
    %c0_2 = arith.constant 0 : index
    %1 = vector.load %arg2[%c0_1, %c0_2] : memref<1x32xf32, #tpu.memory_space<vmem>>, vector<1x32xf32>
    %cst = arith.constant dense<0.000000e+00> : vector<16xf32>
    %2 = vector.multi_reduction <add>, %0, %cst [1] : vector<16x32xf32> to vector<16xf32>
    %3 = vector.shape_cast %2 : vector<16xf32> to vector<16x1xf32>
    %cst_3 = arith.constant 3.125000e-02 : f32
    %4 = vector.broadcast %cst_3 : f32 to vector<16x1xf32>
    %5 = arith.mulf %3, %4 : vector<16x1xf32>
    %6 = arith.mulf %0, %0 : vector<16x32xf32>
    %cst_4 = arith.constant dense<0.000000e+00> : vector<16xf32>
    %7 = vector.multi_reduction <add>, %6, %cst_4 [1] : vector<16x32xf32> to vector<16xf32>
    %8 = vector.shape_cast %7 : vector<16xf32> to vector<16x1xf32>
    %cst_5 = arith.constant 3.125000e-02 : f32
    %9 = vector.broadcast %cst_5 : f32 to vector<16x1xf32>
    %10 = arith.mulf %8, %9 : vector<16x1xf32>
    %11 = arith.mulf %5, %5 : vector<16x1xf32>
    %12 = arith.subf %10, %11 : vector<16x1xf32>
    %cst_6 = arith.constant 0.000000e+00 : f32
    %13 = vector.broadcast %cst_6 : f32 to vector<16x1xf32>
    %14 = arith.maximumf %12, %13 : vector<16x1xf32>
    %cst_7 = arith.constant 9.99999974E-6 : f32
    %15 = vector.broadcast %cst_7 : f32 to vector<16x1xf32>
    %16 = arith.addf %14, %15 : vector<16x1xf32>
    %17 = math.rsqrt %16 : vector<16x1xf32>
    %18 = vector.broadcast %17 : vector<16x1xf32> to vector<16x32xf32>
    %19 = arith.mulf %0, %18 : vector<16x32xf32>
    %20 = vector.broadcast %1 : vector<1x32xf32> to vector<16x32xf32>
    %21 = arith.mulf %19, %20 : vector<16x32xf32>
    %c0_8 = arith.constant 0 : index
    %c0_9 = arith.constant 0 : index
    %22 = vector.load %arg3[%c0_8, %c0_9] : memref<16x32xf32, #tpu.memory_space<vmem>>, vector<16x32xf32>
    tpu.vector_store %arg3[%c0_8, %c0_9], %21 {strides = array<i32>} : memref<16x32xf32, #tpu.memory_space<vmem>>, vector<16x32xf32>,
    return
  }
  func.func @transform_0(%arg0: i32) -> (i32, i32) {
    %c0_i32 = arith.constant 0 : i32
    %c0_i32_0 = arith.constant 0 : i32
    return %arg0, %c0_i32 : i32, i32
  }
  func.func @transform_1(%arg0: i32) -> (i32, i32) {
    %c0_i32 = arith.constant 0 : i32
    %c0_i32_0 = arith.constant 0 : i32
    %c0_i32_1 = arith.constant 0 : i32
    return %c0_i32, %c0_i32_0 : i32, i32
  }
  func.func @transform_2(%arg0: i32) -> (i32, i32) {
    %c0_i32 = arith.constant 0 : i32
    %c0_i32_0 = arith.constant 0 : i32
    return %arg0, %c0_i32 : i32, i32
  }
}

</mosaic_0001>

<bundles_post_ra>
// kernel: biasfree_layernorm.1
= control target key start
LH: loop header
LB: loop body
LE: loop exit
PB: predicated region body
PF: predicated region fallthrough
CT: control target
= control target key end

     0   :  { %7 = vsyncpa [#allocation3], 0  ;;  %s202_s0 = inlined_call_operand.hbm [shape: f32[16,32], index: 0, kind: input, shape index: {}]   ;;  %s203_s1 = inlined_call_operand.vmem [shape: f32[1,32], index: 1, kind: input, shape index: {}]   ;;  %s204_s2 = inlined_call_operand.hbm [shape: f32[16,32], index: 2, kind: output, shape index: {}]  }
   0x1   :  { %8 = vsyncpa [#allocation4], 0  ;;  %s144_s9 = smov [#allocation2]   ;;  %s96_s13 = scalar_lea.hbm %s202_s0, 256 }
   0x2   :  { %s14_s10 = sshll.u32 %s144_s9, 4  ;;  %p97_p0 = scmp.ne.s32.totalorder %s202_s0, %s96_s13  ;;  %s15_s10 = int_to_ptr.vmem [resolvable:$true] %s14_s10 }
   0x3   :  { %p100_p1 = scmp.lt.u32.totalorder %s96_s13, %s202_s0 }
   0x5   :  { %p102_p2 = pnand %p100_p1, %p97_p0 }
   0x7   :  { %105 = shalt.err (!%p102_p2)
}
   0x8   :  { %s106_s18 = scalar_lea.vmem %s15_s10, 256  ;;  %p111_p4 = scmp.lt.s32.totalorder %s15_s10, %s15_s10 }
   0x9   :  { %p107_p3 = scmp.ne.s32.totalorder %s15_s10, %s106_s18  ;;  %p112_p5 = scmp.lt.s32.totalorder %s106_s18, %s106_s18 }
   0xb   :  { %p113_p6 = por %p112_p5, %p111_p4 }
   0xd   :  { %p114_p7 = pnand %p113_p6, %p107_p3 }
   0xf   :  { %117 = shalt.err (!%p114_p7)
}
  0x10   :  { %s145_s19 = smov 128   ;;  %s146_s20 = smov 8  }
  0x11   :  { %20 = dma.hbm_to_vmem [thread:$0]  %s202_s0, 256, %s15_s10, [#allocation3], %s145_s19, %s145_s19, %s146_s20  }
  0x12   :  { %140 = dma.done.wait [#allocation3], 256  }
  0x13   :  { %141 = vsyncadd [#allocation3], 4294967040  ;;  %vm29_vm0 = vcmask 261120   ;;  %v26_v0 = vld [vmem:[#allocation2] sm:$0xff]  ;;  %v27_v1 = vld [vmem:[#allocation2 + $0x8] sm:$0xff]  ;;  %s147_s24 = smov [#allocation5]  }
  0x14   :  { %v30_v2 = vsel %vm29_vm0, %v26_v0, 0.0  ;;  %v38_v3 = vmul.f32 %v26_v0, %v26_v0  ;;  %v39_v4 = vmul.f32 %v27_v1, %v27_v1  ;;  %v33_v6 = vsel %vm29_vm0, %v27_v1, 0.0  ;;  %v87_v25 = vld [vmem:[%s203_s1] ss:$0 sm:$0xff]  ;;  %s75_s25 = sshll.u32 %s147_s24, 4  ;;  %s76_s25 = int_to_ptr.vmem [resolvable:$true] %s75_s25 }
  0x15   :  { %31 = vadd.xlane.f32.xlu0 %v30_v2  ;;  %s118_s26 = scalar_lea.vmem %s76_s25, 256  ;;  %p123_p9 = scmp.lt.s32.totalorder %s76_s25, %s76_s25 }
  0x16   :  { %v40_v5 = vsel %vm29_vm0, %v38_v3, 0.0  ;;  %v43_v7 = vsel %vm29_vm0, %v39_v4, 0.0  ;;  %p119_p8 = scmp.ne.s32.totalorder %s76_s25, %s118_s26  ;;  %p124_p10 = scmp.lt.s32.totalorder %s118_s26, %s118_s26 }
  0x17   :  { %41 = vadd.xlane.f32.xlu1 %v40_v5 }
  0x18   :  { %p125_p11 = por %p124_p10, %p123_p9 }
  0x19   :  { %34 = vadd.xlane.f32.xlu0 %v33_v6 }
  0x1a   :  { %p126_p12 = pnand %p125_p11, %p119_p8 }
  0x1b   :  { %44 = vadd.xlane.f32.xlu1 %v43_v7 }
  0xa2   :  { %v32_v8 = vpop.xlane.xlu0 %31 }
  0xa3   :  { %v36_v9 = vmul.f32 0.03125, %v32_v8 }
  0xa4   :  { %v42_v10 = vpop.xlane.xlu1 %41 }
  0xa5   :  { %v48_v11 = vmul.f32 %v36_v9, %v36_v9  ;;  %v46_v12 = vmul.f32 0.03125, %v42_v10 }
  0xa6   :  { %v35_v13 = vpop.xlane.xlu0 %34 }
  0xa7   :  { %v50_v14 = vsub.f32 %v46_v12, %v48_v11  ;;  %v37_v15 = vmul.f32 0.03125, %v35_v13 }
  0xa8   :  { %v45_v16 = vpop.xlane.xlu1 %44 }
  0xa9   :  { %v52_v17 = vmax.f32 %v50_v14, 0.0  ;;  %v49_v18 = vmul.f32 %v37_v15, %v37_v15  ;;  %v47_v19 = vmul.f32 0.03125, %v45_v16 }
  0xab   :  { %v54_v20 = vadd.f32 1e-05, %v52_v17  ;;  %v51_v21 = vsub.f32 %v47_v19, %v49_v18 }
  0xad   :  { %92 = vrsqrt.f32 %v54_v20  ;;  %v53_v22 = vmax.f32 %v51_v21, 0.0 }
  0xaf   :  { %v55_v23 = vadd.f32 1e-05, %v53_v22 }
  0xb1   :  { %94 = vrsqrt.f32 %v55_v23 }
  0xb7   :  { %v93_v24 = vpop.eup %92 }
  0xb8   :  { %v58_v26 = vmul.f32 %v93_v24, %v26_v0 }
  0xba   :  { %v66_v27 = vmul.f32 %v87_v25, %v58_v26 }
  0xbb   :  { %v95_v28 = vpop.eup %94 }
  0xbc   :  { %v59_v29 = vmul.f32 %v95_v28, %v27_v1  ;;  %68 = vst.msk [vmem:[#allocation5] sm:$0xff] %vm29_vm0, %v66_v27 }
  0xbe   :  { %v67_v30 = vmul.f32 %v87_v25, %v59_v29 }
  0xc0   :  { %69 = vst.msk [vmem:[#allocation5 + $0x8] sm:$0xff] %vm29_vm0, %v67_v30 }
  0xc1   :  { %129 = shalt.err (!%p126_p12)
}
  0xc2   :  { %s130_s28 = scalar_lea.hbm %s204_s2, 256 }
  0xc3   :  { %p131_p13 = scmp.ne.s32.totalorder %s204_s2, %s130_s28  ;;  %p134_p0 = scmp.lt.u32.totalorder %s130_s28, %s204_s2 }
  0xc5   :  { %p136_p1 = pnand %p134_p0, %p131_p13 }
  0xc7   :  { %139 = shalt.err (!%p136_p1)
}
  0xc8   :  { %81 = dma.vmem_to_hbm [thread:$0]  %s76_s25, 256, %s204_s2, [#allocation4], %s145_s19, %s145_s19, %s146_s20  }
  0xc9   :  { %142 = dma.done.wait [#allocation4], 256  }
  0xca   :  { %143 = vsyncadd [#allocation4], 4294967040 }
  0xcb   :  { %85 = vsyncpa [#allocation3], 1 }
  0xcc   :  { %86 = vsyncpa [#allocation4], 1 }

</bundles_post_ra>
